<compile_context>
chip_gen: v7x
topology: tpu7x:2x2x1
jax: 0.10.0
libtpu: 0.0.40
codegen_flags: <defaults>
</compile_context>

<pallas_src>
import jax
import jax.numpy as jnp
from jax.experimental import pallas as pl
from jax.experimental.pallas import tpu as pltpu


def _round_up(x, m):
    return ((x + m - 1) // m) * m


def gmf_kernel(eu_ref, ei_ref, w_ref, b_ref, out_ref):
    # eu_ref, ei_ref : [F, tb]  VMEM tiles (factors on sublanes, batch on lanes)
    # w_ref          : [F, 1]   VMEM (replicated across grid steps)
    # b_ref          : [1]      SMEM scalar bias
    # out_ref        : [1, tb]  VMEM, lane-dense output slab
    h = eu_ref[...] * ei_ref[...]                    # [F, tb]  VPU, lane-dense
    hw = h * w_ref[...]                              # broadcast [F,1] over lanes
    p = jnp.sum(hw, axis=0, keepdims=True)           # [1, tb]  sublane reduce (XLU)
    out_ref[...] = (p + b_ref[0]).astype(out_ref.dtype)


def gmf_forward(user, item, embed_user_w, embed_item_w, pred_w, pred_b, *, tb=8192):
    """GMF forward. Returns shape [B] predictions (float32)."""
    B = user.shape[0]
    F = embed_user_w.shape[1]

    # Batch tile: multiple of 128 for unmasked full-lane stores; capped by the
    # (padded) batch so tiny demo batches don't over-pad.  tb=8192 ->
    # 2 inputs x 2 pipeline buffers x (F*tb*4 B) ~= 4 MiB VMEM at F=32, fine on
    # v5e/v6e/v7x default scoped-VMEM limits.
    tb = min(tb, _round_up(max(B, 1), 128))
    tb = _round_up(tb, 128)
    B_pad = _round_up(B, tb)
    grid = B_pad // tb

    # Pad the cheap index vectors (not the gathered [B, F] arrays).
    if B_pad != B:
        pad = jnp.zeros((B_pad - B,), dtype=user.dtype)
        user = jnp.concatenate([user, pad])
        item = jnp.concatenate([item, pad])

    # --- glue: embedding lookups (gather), laid out [F, B_pad] for the kernel ---
    eu_t = jnp.take(embed_user_w, user, axis=0).T    # [F, B_pad]
    ei_t = jnp.take(embed_item_w, item, axis=0).T    # [F, B_pad]

    w_col = pred_w.reshape(F, 1).astype(jnp.float32)       # Linear weight as [F, 1]
    b = pred_b.reshape(1).astype(jnp.float32)               # scalar bias -> SMEM

    itemsize = jnp.dtype(eu_t.dtype).itemsize
    cost = pl.CostEstimate(
        flops=3 * B_pad * F,
        transcendentals=0,
        bytes_accessed=2 * B_pad * F * itemsize + B_pad * 4 + F * 4,
    )

    out = pl.pallas_call(
        gmf_kernel,
        out_shape=jax.ShapeDtypeStruct((1, B_pad), jnp.float32),
        grid_spec=pltpu.PrefetchScalarGridSpec(
            num_scalar_prefetch=0,
            grid=(grid,),
            in_specs=[
                pl.BlockSpec((F, tb), lambda i: (0, i)),   # eu tile [F, tb]
                pl.BlockSpec((F, tb), lambda i: (0, i)),   # ei tile [F, tb]
                pl.BlockSpec((F, 1), lambda i: (0, 0)),    # weight col (replicated)
                pl.BlockSpec(memory_space=pltpu.MemorySpace.SMEM),  # bias scalar
            ],
            out_specs=pl.BlockSpec((1, tb), lambda i: (0, i)),      # lane-dense slab
        ),
        compiler_params=pltpu.CompilerParams(
            dimension_semantics=("parallel",),
        ),
        cost_estimate=cost,
    )(eu_t, ei_t, w_col, b)

    return out.reshape(-1)[:B]                  # [B], matches prediction.view(-1)


if __name__ == "__main__":
    # Small, deterministic synthetic setup (matches module __init__ shapes).
    user_num, item_num, factor_num = 64, 128, 32
    B = 16

    key = jax.random.PRNGKey(0)
    k1, k2, k3, k4, k5, k6 = jax.random.split(key, 6)

    # nn.Embedding weights, normal(std=0.01)
    embed_user_w = 0.01 * jax.random.normal(k1, (user_num, factor_num), jnp.float32)
    embed_item_w = 0.01 * jax.random.normal(k2, (item_num, factor_num), jnp.float32)

    # nn.Linear(factor_num, 1): kaiming_uniform_(a=1) -> U(-bound, bound),
    # bound = sqrt(6 / ((1 + a^2) * fan_in)) = sqrt(3 / fan_in)
    bound_w = (3.0 / factor_num) ** 0.5
    pred_w = jax.random.uniform(k3, (1, factor_num), jnp.float32, -bound_w, bound_w)
    bound_b = 1.0 / (factor_num ** 0.5)   # default PyTorch Linear bias init
    pred_b = jax.random.uniform(k4, (1,), jnp.float32, -bound_b, bound_b)

    user = jax.random.randint(k5, (B,), 0, user_num, jnp.int32)
    item = jax.random.randint(k6, (B,), 0, item_num, jnp.int32)

    out = gmf_forward(user, item, embed_user_w, embed_item_w, pred_w, pred_b)
    out = jax.block_until_ready(out)

    # Pure-JAX reference check.
    eu = embed_user_w[user]
    ei = embed_item_w[item]
    ref = ((eu * ei) @ pred_w.T + pred_b).reshape(-1)
    assert out.shape == (B,)
    assert jnp.allclose(out, ref, atol=1e-5, rtol=1e-5)

    print("KERNEL_OK")
</pallas_src>

<mosaic_0001>
module attributes {stable_mosaic.version = 11 : i64} {
  func.func @gmf_kernel(%arg0: i32, %arg1: memref<32x128xf32, #tpu.memory_space<vmem>>, %arg2: memref<32x128xf32, #tpu.memory_space<vmem>>, %arg3: memref<32x1xf32, #tpu.memory_space<vmem>>, %arg4: memref<1xf32, #tpu.memory_space<smem>>, %arg5: memref<1x128xf32, #tpu.memory_space<vmem>>) attributes {dimension_semantics = [#tpu.dimension_semantics<parallel>], iteration_bounds = array<i64: 1>, scalar_prefetch = 0 : i64, scratch_operands = 0 : i64, tpu.core_type = #tpu.core_type<tc>, window_params = [{transform_indices = @transform_0, window_bounds = array<i64: 32, 128>}, {transform_indices = @transform_1, window_bounds = array<i64: 32, 128>}, {pipeline_mode = #tpu.pipeline_mode<synchronous>, transform_indices = @transform_2, window_bounds = array<i64: 32, 1>}, {transform_indices = @transform_3, window_bounds = array<i64: 1>}, {transform_indices = @transform_4, window_bounds = array<i64: 1, 128>}]} {
    %c0 = arith.constant 0 : index
    %c0_0 = arith.constant 0 : index
    %0 = vector.load %arg1[%c0, %c0_0] : memref<32x128xf32, #tpu.memory_space<vmem>>, vector<32x128xf32>
    %c0_1 = arith.constant 0 : index
    %c0_2 = arith.constant 0 : index
    %1 = vector.load %arg2[%c0_1, %c0_2] : memref<32x128xf32, #tpu.memory_space<vmem>>, vector<32x128xf32>
    %2 = arith.mulf %0, %1 : vector<32x128xf32>
    %c0_3 = arith.constant 0 : index
    %c0_4 = arith.constant 0 : index
    %3 = vector.load %arg3[%c0_3, %c0_4] : memref<32x1xf32, #tpu.memory_space<vmem>>, vector<32x1xf32>
    %4 = vector.broadcast %3 : vector<32x1xf32> to vector<32x128xf32>
    %5 = arith.mulf %2, %4 : vector<32x128xf32>
    %cst = arith.constant dense<0.000000e+00> : vector<128xf32>
    %6 = vector.multi_reduction <add>, %5, %cst [0] : vector<32x128xf32> to vector<128xf32>
    %7 = vector.shape_cast %6 : vector<128xf32> to vector<1x128xf32>
    %c0_5 = arith.constant 0 : index
    %8 = memref.load %arg4[%c0_5] : memref<1xf32, #tpu.memory_space<smem>>
    %9 = vector.broadcast %8 : f32 to vector<1x128xf32>
    %10 = arith.addf %7, %9 : vector<1x128xf32>
    %c0_6 = arith.constant 0 : index
    %c0_7 = arith.constant 0 : index
    %11 = vector.load %arg5[%c0_6, %c0_7] : memref<1x128xf32, #tpu.memory_space<vmem>>, vector<1x128xf32>
    tpu.vector_store %arg5[%c0_6, %c0_7], %10 {strides = array<i32>} : memref<1x128xf32, #tpu.memory_space<vmem>>, vector<1x128xf32>,
    return
  }
  func.func @transform_0(%arg0: i32) -> (i32, i32) {
    %c0_i32 = arith.constant 0 : i32
    %c0_i32_0 = arith.constant 0 : i32
    return %c0_i32, %arg0 : i32, i32
  }
  func.func @transform_1(%arg0: i32) -> (i32, i32) {
    %c0_i32 = arith.constant 0 : i32
    %c0_i32_0 = arith.constant 0 : i32
    return %c0_i32, %arg0 : i32, i32
  }
  func.func @transform_2(%arg0: i32) -> (i32, i32) {
    %c0_i32 = arith.constant 0 : i32
    %c0_i32_0 = arith.constant 0 : i32
    %c0_i32_1 = arith.constant 0 : i32
    return %c0_i32, %c0_i32_0 : i32, i32
  }
  func.func @transform_3(%arg0: i32) -> i32 {
    %c0_i32 = arith.constant 0 : i32
    %c0_i32_0 = arith.constant 0 : i32
    return %c0_i32 : i32
  }
  func.func @transform_4(%arg0: i32) -> (i32, i32) {
    %c0_i32 = arith.constant 0 : i32
    %c0_i32_0 = arith.constant 0 : i32
    return %c0_i32, %arg0 : i32, i32
  }
}

</mosaic_0001>

<bundles_post_ra>
// kernel: tpu_custom_call.1
= control target key start
LH: loop header
LB: loop body
LE: loop exit
PB: predicated region body
PF: predicated region fallthrough
CT: control target
= control target key end

     0   :  { %10 = vsyncpa [#allocation4], 0  ;;  %s237_s0 = inlined_call_operand.vmem [shape: f32[32,128], index: 0, kind: input, shape index: {}]   ;;  %s238_s1 = inlined_call_operand.hbm [shape: f32[32,128], index: 1, kind: input, shape index: {}]   ;;  %s239_s2 = inlined_call_operand.vmem [shape: f32[32,1], index: 2, kind: input, shape index: {}]   ;;  %s240_s3 = inlined_call_operand.<no memory space> [shape: f32[1], index: 3, kind: input, shape index: {}]   ;;  %s241_s4 = inlined_call_operand.hbm [shape: f32[1,128], index: 4, kind: output, shape index: {}]  }
   0x1   :  { %11 = vsyncpa [#allocation5], 0  ;;  %s156_s15 = smov [#allocation3]   ;;  %s108_s19 = scalar_lea.hbm %s238_s1, 512 }
   0x2   :  { %s19_s16 = sshll.u32 %s156_s15, 4  ;;  %p109_p0 = scmp.ne.s32.totalorder %s238_s1, %s108_s19  ;;  %s20_s16 = int_to_ptr.vmem [resolvable:$true] %s19_s16 }
   0x3   :  { %p112_p1 = scmp.lt.u32.totalorder %s108_s19, %s238_s1 }
   0x5   :  { %p114_p2 = pnand %p112_p1, %p109_p0 }
   0x7   :  { %117 = shalt.err (!%p114_p2)
}
   0x8   :  { %s118_s24 = scalar_lea.vmem %s20_s16, 512  ;;  %p123_p4 = scmp.lt.s32.totalorder %s20_s16, %s20_s16 }
   0x9   :  { %p119_p3 = scmp.ne.s32.totalorder %s20_s16, %s118_s24  ;;  %p124_p5 = scmp.lt.s32.totalorder %s118_s24, %s118_s24 }
   0xb   :  { %p125_p6 = por %p124_p5, %p123_p4 }
   0xd   :  { %p126_p7 = pnand %p125_p6, %p119_p3 }
   0xf   :  { %129 = shalt.err (!%p126_p7)
}
  0x10   :  { %s157_s25 = smov 128   ;;  %s158_s26 = smov 8  }
  0x11   :  { %25 = dma.hbm_to_vmem [thread:$0]  %s238_s1, 512, %s20_s16, [#allocation4], %s157_s25, %s157_s25, %s158_s26  }
  0x12   :  { %152 = dma.done.wait [#allocation4], 512  }
  0x13   :  { %153 = vsyncadd [#allocation4], 4294966784  ;;  %v159_v0 = vmov 0   ;;  %v47_v1 = vld [vmem:[%s239_s2 + $0x10] sm:$0xff]  ;;  %v45_v2 = vld [vmem:[%s239_s2] sm:$0xff]  ;;  %v83_v33 = vstv %s240_s3 }
  0x14   :  { %107 = vset.pattern.permute.xlu1 %v159_v0  ;;  %106 = vset.pattern.permute.xlu0 %v159_v0  ;;  %v48_v3 = vld [vmem:[%s239_s2 + $0x18] sm:$0xff]  ;;  %v46_v4 = vld [vmem:[%s239_s2 + $0x8] sm:$0xff]  ;;  %v33_v5 = vld [vmem:[%s237_s0] sm:$0xff] }
  0x15   :  { %61 = vperm.xlu1 %107, %v47_v1   ;;  %51 = vperm.xlu0 %106, %v45_v2   ;;  %v37_v6 = vld [vmem:[#allocation3] sm:$0xff]  ;;  %v34_v7 = vld [vmem:[%s237_s0 + $0x8] sm:$0xff]  ;;  %v35_v10 = vld [vmem:[%s237_s0 + $0x10] sm:$0xff] }
  0x16   :  { %v38_v8 = vld [vmem:[#allocation3 + $0x8] sm:$0xff]  ;;  %v39_v11 = vld [vmem:[#allocation3 + $0x10] sm:$0xff]  ;;  %v41_v13 = vmul.f32 %v37_v6, %v33_v5  ;;  %v36_v15 = vld [vmem:[%s237_s0 + $0x18] sm:$0xff]  ;;  %s160_s0 = smov [#allocation6]  }
  0x17   :  { %v42_v14 = vmul.f32 %v38_v8, %v34_v7  ;;  %v40_v16 = vld [vmem:[#allocation3 + $0x18] sm:$0xff]  ;;  %v43_v17 = vmul.f32 %v39_v11, %v35_v10  ;;  %s92_s19 = sshll.u32 %s160_s0, 4  ;;  %s93_s19 = int_to_ptr.vmem [resolvable:$true] %s92_s19 }
  0x18   :  { %v44_v20 = vmul.f32 %v40_v16, %v36_v15  ;;  %s130_s20 = scalar_lea.vmem %s93_s19, 16  ;;  %s134_s21 = scalar_lea.vmem %s93_s19, 32 }
  0x19   :  { %66 = vperm.xlu1 %107, %v48_v3   ;;  %56 = vperm.xlu0 %106, %v46_v4   ;;  %p131_p8 = scmp.ne.s32.totalorder %s93_s19, %s130_s20  ;;  %p135_p9 = scmp.lt.s32.totalorder %s93_s19, %s93_s19 }
  0x1a   :  { %p136_p10 = scmp.lt.s32.totalorder %s134_s21, %s130_s20 }
  0x1c   :  { %p137_p11 = por %p136_p10, %p135_p9 }
  0x1e   :  { %p138_p12 = pnand %p137_p11, %p131_p8 }
  0x94   :  { %v62_v9 = vpop.permute.xlu1 %61  ;;  %v52_v12 = vpop.permute.xlu0 %51 }
  0x95   :  { %v69_v19 = vmul.f32 %v52_v12, %v41_v13  ;;  %v71_v23 = vmul.f32 %v62_v9, %v43_v17 }
  0x98   :  { %v57_v18 = vpop.permute.xlu0 %56  ;;  %v67_v22 = vpop.permute.xlu1 %66 }
  0x99   :  { %v70_v21 = vmul.f32 %v57_v18, %v42_v14  ;;  %v72_v25 = vmul.f32 %v67_v22, %v44_v20 }
  0x9b   :  { %v73_v24 = vadd.f32 %v70_v21, %v69_v19 }
  0x9d   :  { %v74_v26 = vadd.f32 %v73_v24, %v71_v23 }
  0x9f   :  { %v75_v27 = vadd.f32 %v74_v26, %v72_v25 }
  0xa1   :  { %v76_v28 = vrot.slane %v75_v27, 4 }
  0xa3   :  { %v77_v29 = vadd.f32 %v76_v28, %v75_v27 }
  0xa5   :  { %v78_v30 = vrot.slane %v77_v29, 2 }
  0xa7   :  { %v79_v31 = vadd.f32 %v78_v30, %v77_v29 }
  0xa9   :  { %v80_v32 = vrot.slane %v79_v31, 1 }
  0xab   :  { %v81_v34 = vadd.f32 %v80_v32, %v79_v31 }
  0xad   :  { %v84_v35 = vadd.f32 %v83_v33, %v81_v34 }
  0xaf   :  { %85 = vst [vmem:[#allocation6] sm:$0x1] %v84_v35 }
  0xb0   :  { %141 = shalt.err (!%p138_p12)
}
  0xb1   :  { %s142_s24 = scalar_lea.hbm %s241_s4, 16 }
  0xb2   :  { %p143_p13 = scmp.ne.s32.totalorder %s241_s4, %s142_s24  ;;  %p146_p0 = scmp.lt.u32.totalorder %s142_s24, %s241_s4 }
  0xb4   :  { %p148_p1 = pnand %p146_p0, %p143_p13 }
  0xb6   :  { %151 = shalt.err (!%p148_p1)
}
  0xb7   :  { %95 = dma.vmem_to_hbm [thread:$0]  %s93_s19, 16, %s241_s4, [#allocation5]  }
  0xb8   :  { %154 = dma.done.wait [#allocation5], 16  }
  0xb9   :  { %155 = vsyncadd [#allocation5], 4294967280 }
  0xba   :  { %99 = vsyncpa [#allocation4], 1 }
  0xbb   :  { %100 = vsyncpa [#allocation5], 1 }

</bundles_post_ra>
